<compile_context>
chip_gen: v5e
topology: v5e:2x2
jax: 0.10.0
libtpu: 0.0.40
codegen_flags: <defaults>
</compile_context>

<pallas_src>
import jax
import jax.numpy as jnp
from jax.experimental import pallas as pl
from jax.experimental.pallas import tpu as pltpu

_VMEM_LIMIT = 48 << 20  # safe on v5e/v6e (128 MiB) and v7x (64 MiB physical)


# ----------------------------- Pallas kernels ------------------------------ #

def _feature_transform_kernel(x_ref, w_ref, o_ref):
    """XW = X @ W (bf16 out, f32 MXU accumulation).

    PyG GCNConv applies bias after aggregation, so no bias/ReLU here.
    """
    o_ref[...] = jnp.dot(
        x_ref[...], w_ref[...], preferred_element_type=jnp.float32
    ).astype(o_ref.dtype)


def _aggregate_kernel(a_ref, xw_ref, b_ref, o_ref, acc_ref):
    """o = relu(A_hat @ XW + b); grid = (row tiles, K tiles of A columns)."""
    k = pl.program_id(1)

    @pl.when(k == 0)
    def _():
        acc_ref[...] = jnp.zeros_like(acc_ref)

    # (tm, tk) @ (tk, f_out), bf16 operands, f32 accumulation on the MXU.
    acc_ref[...] += jnp.dot(a_ref[...], xw_ref[...],
                            preferred_element_type=jnp.float32)

    @pl.when(k == pl.num_programs(1) - 1)
    def _():
        o_ref[...] = jnp.maximum(acc_ref[...] + b_ref[...], 0.0).astype(o_ref.dtype)


def _aggregate_cls_kernel(a_ref, xw_ref, b_ref, wc_ref, bc_ref, o_ref, acc_ref):
    """o = relu(A_hat @ XW + b) @ Wc + bc  (Linear classifier fused in epilogue)."""
    k = pl.program_id(1)

    @pl.when(k == 0)
    def _():
        acc_ref[...] = jnp.zeros_like(acc_ref)

    acc_ref[...] += jnp.dot(a_ref[...], xw_ref[...],
                            preferred_element_type=jnp.float32)

    @pl.when(k == pl.num_programs(1) - 1)
    def _():
        h = jnp.maximum(acc_ref[...] + b_ref[...], 0.0)          # (tm, h_p) f32
        out = jnp.dot(h.astype(wc_ref.dtype), wc_ref[...],
                      preferred_element_type=jnp.float32) + bc_ref[...]
        o_ref[...] = out.astype(o_ref.dtype)


# ------------------------------ pallas_call wrappers ------------------------ #

def _feature_transform(x, w, *, tm, out_dtype=jnp.bfloat16):
    n_pad, f_in = x.shape
    f_out = w.shape[1]
    # TODO(synk): add a K-tiled variant if f_in grows so large that the
    # (tm, f_in) X tile no longer fits comfortably in VMEM.
    return pl.pallas_call(
        _feature_transform_kernel,
        out_shape=jax.ShapeDtypeStruct((n_pad, f_out), out_dtype),
        grid_spec=pltpu.PrefetchScalarGridSpec(
            num_scalar_prefetch=0,
            grid=(n_pad // tm,),
            in_specs=[
                pl.BlockSpec((tm, f_in), lambda i: (i, 0)),       # X row tile
                pl.BlockSpec((f_in, f_out), lambda i: (0, 0)),    # W (resident)
            ],
            out_specs=pl.BlockSpec((tm, f_out), lambda i: (i, 0)),
        ),
        compiler_params=pltpu.CompilerParams(
            dimension_semantics=("parallel",),
            vmem_limit_bytes=_VMEM_LIMIT),
    )(x, w)


def _aggregate(a_hat, xw, b, *, tm, tk, out_dtype):
    n_pad = a_hat.shape[0]
    f_out = xw.shape[1]
    grid = (n_pad // tm, n_pad // tk)
    return pl.pallas_call(
        _aggregate_kernel,
        out_shape=jax.ShapeDtypeStruct((n_pad, f_out), out_dtype),
        grid_spec=pltpu.PrefetchScalarGridSpec(
            num_scalar_prefetch=0,
            grid=grid,
            in_specs=[
                pl.BlockSpec((tm, tk), lambda i, k: (i, k)),      # A_hat (dominant stream)
                pl.BlockSpec((tk, f_out), lambda i, k: (k, 0)),   # XW rows for K slice
                pl.BlockSpec((1, f_out), lambda i, k: (0, 0)),    # bias (tiny, invariant)
            ],
            out_specs=pl.BlockSpec((tm, f_out), lambda i, k: (i, 0)),
            scratch_shapes=[pltpu.VMEM((tm, f_out), jnp.float32)],
        ),
        compiler_params=pltpu.CompilerParams(
            dimension_semantics=("parallel", "arbitrary"),
            vmem_limit_bytes=_VMEM_LIMIT),
    )(a_hat, xw, b)


def _aggregate_cls(a_hat, xw, b, wc, bc, *, tm, tk, out_dtype):
    n_pad = a_hat.shape[0]
    f_hid = xw.shape[1]
    f_out = wc.shape[1]
    grid = (n_pad // tm, n_pad // tk)
    return pl.pallas_call(
        _aggregate_cls_kernel,
        out_shape=jax.ShapeDtypeStruct((n_pad, f_out), out_dtype),
        grid_spec=pltpu.PrefetchScalarGridSpec(
            num_scalar_prefetch=0,
            grid=grid,
            in_specs=[
                pl.BlockSpec((tm, tk), lambda i, k: (i, k)),      # A_hat
                pl.BlockSpec((tk, f_hid), lambda i, k: (k, 0)),   # XW rows for K slice
                pl.BlockSpec((1, f_hid), lambda i, k: (0, 0)),    # b2
                pl.BlockSpec((f_hid, f_out), lambda i, k: (0, 0)),  # Wc (resident)
                pl.BlockSpec((1, f_out), lambda i, k: (0, 0)),    # bc
            ],
            out_specs=pl.BlockSpec((tm, f_out), lambda i, k: (i, 0)),
            scratch_shapes=[pltpu.VMEM((tm, f_hid), jnp.float32)],
        ),
        compiler_params=pltpu.CompilerParams(
            dimension_semantics=("parallel", "arbitrary"),
            vmem_limit_bytes=_VMEM_LIMIT),
    )(a_hat, xw, b, wc, bc)


# ------------------------------ GCN wrapper -------------------------------- #

def _round_up(x, m):
    return (x + m - 1) // m * m


def _pad2(a, shape):
    return jnp.pad(a, ((0, shape[0] - a.shape[0]), (0, shape[1] - a.shape[1])))


def _choose_tiles(n):
    """Pick (tm, tk, n_pad) with tm | tk | n_pad.

    tk up to 1024 (1 MiB bf16 A tile with tm=512) since the kernel is HBM-bound
    on the A_hat stream; tm chosen so that whenever the padded graph spans more
    than one tile there are >= 2 row tiles (v7x megacore sharding).
    """
    n128 = _round_up(max(n, 1), 128)
    if n128 >= 1024:
        tk = 1024
    elif n128 >= 512:
        tk = 512
    elif n128 >= 256:
        tk = 256
    else:
        tk = 128
    tm = max(128, tk // 2) if tk >= 256 else 128
    tm = min(tm, 512)
    n_pad = _round_up(n, tk)
    return tm, tk, n_pad


def build_normalized_adjacency(edge_index, num_nodes):
    """Dense A_hat = D^-1/2 (A + I) D^-1/2, PyG GCNConv semantics.

    Messages flow src -> dst (row = destination), duplicate edges accumulate,
    degree counts self-loops.
    """
    src, dst = edge_index[0], edge_index[1]
    adj = jnp.zeros((num_nodes, num_nodes), jnp.float32)
    adj = adj.at[dst, src].add(1.0)                       # duplicates counted like PyG
    adj = adj + jnp.eye(num_nodes, dtype=jnp.float32)     # self loops
    deg = adj.sum(axis=1)
    d_inv_sqrt = jnp.where(deg > 0, jax.lax.rsqrt(deg), 0.0)
    return d_inv_sqrt[:, None] * adj * d_inv_sqrt[None, :]


def init_gcn_params(key, in_dim, hidden_dim, out_dim):
    """Deterministic glorot-uniform-ish init matching the module's shapes."""
    ks = jax.random.split(key, 3)

    def glorot(k, fan_in, fan_out):
        lim = jnp.sqrt(6.0 / (fan_in + fan_out))
        return jax.random.uniform(k, (fan_in, fan_out), jnp.float32, -lim, lim)

    return {
        "w1": glorot(ks[0], in_dim, hidden_dim),
        "b1": jnp.zeros((1, hidden_dim), jnp.float32),
        "w2": glorot(ks[1], hidden_dim, hidden_dim),
        "b2": jnp.zeros((1, hidden_dim), jnp.float32),
        "wc": glorot(ks[2], hidden_dim, out_dim),
        "bc": jnp.zeros((1, out_dim), jnp.float32),
    }


def gcn_forward(params, x, edge_index):
    n, in_dim = x.shape
    hidden = params["w1"].shape[1]
    out_dim = params["wc"].shape[1]

    a_hat = build_normalized_adjacency(edge_index, n)

    tm, tk, n_pad = _choose_tiles(n)

    # Lane-dense padding: every feature dim to a multiple of 128.
    f_in_p = _round_up(in_dim, 128)
    h_p = _round_up(hidden, 128)
    o_p = _round_up(out_dim, 128)

    # NOTE: padded A_hat columns are zero, so padded node rows never contribute
    # to valid outputs even though their layer-1 activations become relu(b1).
    a_p = _pad2(a_hat, (n_pad, n_pad)).astype(jnp.bfloat16)
    x_p = _pad2(x, (n_pad, f_in_p)).astype(jnp.bfloat16)
    w1 = _pad2(params["w1"], (f_in_p, h_p)).astype(jnp.bfloat16)
    b1 = _pad2(params["b1"], (1, h_p)).astype(jnp.float32)
    w2 = _pad2(params["w2"], (h_p, h_p)).astype(jnp.bfloat16)
    b2 = _pad2(params["b2"], (1, h_p)).astype(jnp.float32)
    wc = _pad2(params["wc"], (h_p, o_p)).astype(jnp.bfloat16)
    bc = _pad2(params["bc"], (1, o_p)).astype(jnp.float32)

    # Layer 1: hoisted feature transform, then tiled aggregation + ReLU.
    xw1 = _feature_transform(x_p, w1, tm=tm)
    h1 = _aggregate(a_p, xw1, b1, tm=tm, tk=tk, out_dtype=jnp.bfloat16)

    # Layer 2: hoisted feature transform, aggregation + ReLU + fused classifier.
    xw2 = _feature_transform(h1, w2, tm=tm)
    out = _aggregate_cls(a_p, xw2, b2, wc, bc, tm=tm, tk=tk,
                         out_dtype=jnp.float32)

    out = out[:n, :out_dim]
    return jnp.squeeze(out)  # matches `.squeeze()` in the PyTorch module


# --------------------------------- main ------------------------------------ #

if __name__ == "__main__":
    N = 16          # nodes
    IN_DIM = 8
    HIDDEN_DIM = 32
    OUT_DIM = 4
    E = 32          # edges

    key = jax.random.PRNGKey(0)
    k_x, k_e, k_p = jax.random.split(key, 3)

    x = jax.random.normal(k_x, (N, IN_DIM), jnp.float32)
    edge_index = jax.random.randint(k_e, (2, E), 0, N, jnp.int32)

    params = init_gcn_params(k_p, IN_DIM, HIDDEN_DIM, OUT_DIM)

    out = jax.jit(gcn_forward)(params, x, edge_index)
    jax.block_until_ready(out)

    assert out.shape == (N, OUT_DIM), out.shape
    assert jnp.all(jnp.isfinite(out))
    print("KERNEL_OK")
</pallas_src>

<mosaic_0001>
module attributes {stable_mosaic.version = 11 : i64} {
  func.func @_feature_transform_kernel(%arg0: i32, %arg1: memref<128x128xbf16, #tpu.memory_space<vmem>>, %arg2: memref<128x128xbf16, #tpu.memory_space<vmem>>, %arg3: memref<128x128xbf16, #tpu.memory_space<vmem>>) attributes {dimension_semantics = [#tpu.dimension_semantics<parallel>], iteration_bounds = array<i64: 1>, scalar_prefetch = 0 : i64, scratch_operands = 0 : i64, tpu.core_type = #tpu.core_type<tc>, window_params = [{transform_indices = @transform_0, window_bounds = array<i64: 128, 128>}, {pipeline_mode = #tpu.pipeline_mode<synchronous>, transform_indices = @transform_1, window_bounds = array<i64: 128, 128>}, {transform_indices = @transform_2, window_bounds = array<i64: 128, 128>}]} {
    %c0 = arith.constant 0 : index
    %c0_0 = arith.constant 0 : index
    %0 = vector.load %arg1[%c0, %c0_0] : memref<128x128xbf16, #tpu.memory_space<vmem>>, vector<128x128xbf16>
    %c0_1 = arith.constant 0 : index
    %c0_2 = arith.constant 0 : index
    %1 = vector.load %arg2[%c0_1, %c0_2] : memref<128x128xbf16, #tpu.memory_space<vmem>>, vector<128x128xbf16>
    %cst = arith.constant dense<0.000000e+00> : vector<128x128xf32>
    %2 = tpu.matmul %0, %1, %cst {dimension_numbers = #tpu.dot_dimension_numbers<[1], [0], [0], [1], [0, 0, 1, 1], [], []>} : vector<128x128xbf16>, vector<128x128xbf16>, vector<128x128xf32> -> vector<128x128xf32>
    %3 = arith.truncf %2 : vector<128x128xf32> to vector<128x128xbf16>
    %c0_3 = arith.constant 0 : index
    %c0_4 = arith.constant 0 : index
    %4 = vector.load %arg3[%c0_3, %c0_4] : memref<128x128xbf16, #tpu.memory_space<vmem>>, vector<128x128xbf16>
    tpu.vector_store %arg3[%c0_3, %c0_4], %3 {strides = array<i32>} : memref<128x128xbf16, #tpu.memory_space<vmem>>, vector<128x128xbf16>,
    return
  }
  func.func @transform_0(%arg0: i32) -> (i32, i32) {
    %c0_i32 = arith.constant 0 : i32
    %c0_i32_0 = arith.constant 0 : i32
    return %arg0, %c0_i32 : i32, i32
  }
  func.func @transform_1(%arg0: i32) -> (i32, i32) {
    %c0_i32 = arith.constant 0 : i32
    %c0_i32_0 = arith.constant 0 : i32
    %c0_i32_1 = arith.constant 0 : i32
    return %c0_i32, %c0_i32_0 : i32, i32
  }
  func.func @transform_2(%arg0: i32) -> (i32, i32) {
    %c0_i32 = arith.constant 0 : i32
    %c0_i32_0 = arith.constant 0 : i32
    return %arg0, %c0_i32 : i32, i32
  }
}

module attributes {stable_mosaic.version = 11 : i64} {
  func.func @_aggregate_kernel(%arg0: i32, %arg1: i32, %arg2: memref<128x128xbf16, #tpu.memory_space<vmem>>, %arg3: memref<128x128xbf16, #tpu.memory_space<vmem>>, %arg4: memref<1x128xf32, #tpu.memory_space<vmem>>, %arg5: memref<128x128xbf16, #tpu.memory_space<vmem>>, %arg6: memref<128x128xf32, #tpu.memory_space<vmem>>) attributes {dimension_semantics = [#tpu.dimension_semantics<parallel>, #tpu.dimension_semantics<arbitrary>], iteration_bounds = array<i64: 1, 1>, scalar_prefetch = 0 : i64, scratch_operands = 1 : i64, tpu.core_type = #tpu.core_type<tc>, window_params = [{transform_indices = @transform_0, window_bounds = array<i64: 128, 128>}, {transform_indices = @transform_1, window_bounds = array<i64: 128, 128>}, {pipeline_mode = #tpu.pipeline_mode<synchronous>, transform_indices = @transform_2, window_bounds = array<i64: 1, 128>}, {transform_indices = @transform_3, window_bounds = array<i64: 128, 128>}]} {
    %c0_i32 = arith.constant 0 : i32
    %0 = arith.cmpi eq, %arg1, %c0_i32 : i32
    %1 = arith.extui %0 : i1 to i32
    %c0_i32_0 = arith.constant 0 : i32
    %2 = arith.cmpi ne, %1, %c0_i32_0 : i32
    scf.if %2 {
      %cst_10 = arith.constant 0.000000e+00 : f32
      %12 = vector.broadcast %cst_10 : f32 to vector<128x128xf32>
      %c0_11 = arith.constant 0 : index
      %c0_12 = arith.constant 0 : index
      %13 = vector.load %arg6[%c0_11, %c0_12] : memref<128x128xf32, #tpu.memory_space<vmem>>, vector<128x128xf32>
      tpu.vector_store %arg6[%c0_11, %c0_12], %12 {strides = array<i32>} : memref<128x128xf32, #tpu.memory_space<vmem>>, vector<128x128xf32>,
    } else {
    }
    %c0 = arith.constant 0 : index
    %c0_1 = arith.constant 0 : index
    %3 = vector.load %arg6[%c0, %c0_1] : memref<128x128xf32, #tpu.memory_space<vmem>>, vector<128x128xf32>
    %c0_2 = arith.constant 0 : index
    %c0_3 = arith.constant 0 : index
    %4 = vector.load %arg2[%c0_2, %c0_3] : memref<128x128xbf16, #tpu.memory_space<vmem>>, vector<128x128xbf16>
    %c0_4 = arith.constant 0 : index
    %c0_5 = arith.constant 0 : index
    %5 = vector.load %arg3[%c0_4, %c0_5] : memref<128x128xbf16, #tpu.memory_space<vmem>>, vector<128x128xbf16>
    %cst = arith.constant dense<0.000000e+00> : vector<128x128xf32>
    %6 = tpu.matmul %4, %5, %cst {dimension_numbers = #tpu.dot_dimension_numbers<[1], [0], [0], [1], [0, 0, 1, 1], [], []>} : vector<128x128xbf16>, vector<128x128xbf16>, vector<128x128xf32> -> vector<128x128xf32>
    %7 = arith.addf %3, %6 : vector<128x128xf32>
    %c0_6 = arith.constant 0 : index
    %c0_7 = arith.constant 0 : index
    %8 = vector.load %arg6[%c0_6, %c0_7] : memref<128x128xf32, #tpu.memory_space<vmem>>, vector<128x128xf32>
    tpu.vector_store %arg6[%c0_6, %c0_7], %7 {strides = array<i32>} : memref<128x128xf32, #tpu.memory_space<vmem>>, vector<128x128xf32>,
    %c0_i32_8 = arith.constant 0 : i32
    %9 = arith.cmpi eq, %arg1, %c0_i32_8 : i32
    %10 = arith.extui %9 : i1 to i32
    %c0_i32_9 = arith.constant 0 : i32
    %11 = arith.cmpi ne, %10, %c0_i32_9 : i32
    scf.if %11 {
      %c0_10 = arith.constant 0 : index
      %c0_11 = arith.constant 0 : index
      %12 = vector.load %arg6[%c0_10, %c0_11] : memref<128x128xf32, #tpu.memory_space<vmem>>, vector<128x128xf32>
      %c0_12 = arith.constant 0 : index
      %c0_13 = arith.constant 0 : index
      %13 = vector.load %arg4[%c0_12, %c0_13] : memref<1x128xf32, #tpu.memory_space<vmem>>, vector<1x128xf32>
      %14 = vector.broadcast %13 : vector<1x128xf32> to vector<128x128xf32>
      %15 = arith.addf %12, %14 : vector<128x128xf32>
      %cst_14 = arith.constant 0.000000e+00 : f32
      %16 = vector.broadcast %cst_14 : f32 to vector<128x128xf32>
      %17 = arith.maximumf %15, %16 : vector<128x128xf32>
      %18 = arith.truncf %17 : vector<128x128xf32> to vector<128x128xbf16>
      %c0_15 = arith.constant 0 : index
      %c0_16 = arith.constant 0 : index
      %19 = vector.load %arg5[%c0_15, %c0_16] : memref<128x128xbf16, #tpu.memory_space<vmem>>, vector<128x128xbf16>
      tpu.vector_store %arg5[%c0_15, %c0_16], %18 {strides = array<i32>} : memref<128x128xbf16, #tpu.memory_space<vmem>>, vector<128x128xbf16>,
    } else {
    }
    return
  }
  func.func @transform_0(%arg0: i32, %arg1: i32) -> (i32, i32) {
    %c0_i32 = arith.constant 0 : i32
    return %arg0, %arg1 : i32, i32
  }
  func.func @transform_1(%arg0: i32, %arg1: i32) -> (i32, i32) {
    %c0_i32 = arith.constant 0 : i32
    %c0_i32_0 = arith.constant 0 : i32
    return %arg1, %c0_i32 : i32, i32
  }
  func.func @transform_2(%arg0: i32, %arg1: i32) -> (i32, i32) {
    %c0_i32 = arith.constant 0 : i32
    %c0_i32_0 = arith.constant 0 : i32
    %c0_i32_1 = arith.constant 0 : i32
    return %c0_i32, %c0_i32_0 : i32, i32
  }
  func.func @transform_3(%arg0: i32, %arg1: i32) -> (i32, i32) {
    %c0_i32 = arith.constant 0 : i32
    %c0_i32_0 = arith.constant 0 : i32
    return %arg0, %c0_i32 : i32, i32
  }
}

module attributes {stable_mosaic.version = 11 : i64} {
  func.func @_aggregate_cls_kernel(%arg0: i32, %arg1: i32, %arg2: memref<128x128xbf16, #tpu.memory_space<vmem>>, %arg3: memref<128x128xbf16, #tpu.memory_space<vmem>>, %arg4: memref<1x128xf32, #tpu.memory_space<vmem>>, %arg5: memref<128x128xbf16, #tpu.memory_space<vmem>>, %arg6: memref<1x128xf32, #tpu.memory_space<vmem>>, %arg7: memref<128x128xf32, #tpu.memory_space<vmem>>, %arg8: memref<128x128xf32, #tpu.memory_space<vmem>>) attributes {dimension_semantics = [#tpu.dimension_semantics<parallel>, #tpu.dimension_semantics<arbitrary>], iteration_bounds = array<i64: 1, 1>, scalar_prefetch = 0 : i64, scratch_operands = 1 : i64, tpu.core_type = #tpu.core_type<tc>, window_params = [{transform_indices = @transform_0, window_bounds = array<i64: 128, 128>}, {transform_indices = @transform_1, window_bounds = array<i64: 128, 128>}, {pipeline_mode = #tpu.pipeline_mode<synchronous>, transform_indices = @transform_2, window_bounds = array<i64: 1, 128>}, {pipeline_mode = #tpu.pipeline_mode<synchronous>, transform_indices = @transform_3, window_bounds = array<i64: 128, 128>}, {pipeline_mode = #tpu.pipeline_mode<synchronous>, transform_indices = @transform_4, window_bounds = array<i64: 1, 128>}, {transform_indices = @transform_5, window_bounds = array<i64: 128, 128>}]} {
    %c0_i32 = arith.constant 0 : i32
    %0 = arith.cmpi eq, %arg1, %c0_i32 : i32
    %1 = arith.extui %0 : i1 to i32
    %c0_i32_0 = arith.constant 0 : i32
    %2 = arith.cmpi ne, %1, %c0_i32_0 : i32
    scf.if %2 {
      %cst_10 = arith.constant 0.000000e+00 : f32
      %12 = vector.broadcast %cst_10 : f32 to vector<128x128xf32>
      %c0_11 = arith.constant 0 : index
      %c0_12 = arith.constant 0 : index
      %13 = vector.load %arg8[%c0_11, %c0_12] : memref<128x128xf32, #tpu.memory_space<vmem>>, vector<128x128xf32>
      tpu.vector_store %arg8[%c0_11, %c0_12], %12 {strides = array<i32>} : memref<128x128xf32, #tpu.memory_space<vmem>>, vector<128x128xf32>,
    } else {
    }
    %c0 = arith.constant 0 : index
    %c0_1 = arith.constant 0 : index
    %3 = vector.load %arg8[%c0, %c0_1] : memref<128x128xf32, #tpu.memory_space<vmem>>, vector<128x128xf32>
    %c0_2 = arith.constant 0 : index
    %c0_3 = arith.constant 0 : index
    %4 = vector.load %arg2[%c0_2, %c0_3] : memref<128x128xbf16, #tpu.memory_space<vmem>>, vector<128x128xbf16>
    %c0_4 = arith.constant 0 : index
    %c0_5 = arith.constant 0 : index
    %5 = vector.load %arg3[%c0_4, %c0_5] : memref<128x128xbf16, #tpu.memory_space<vmem>>, vector<128x128xbf16>
    %cst = arith.constant dense<0.000000e+00> : vector<128x128xf32>
    %6 = tpu.matmul %4, %5, %cst {dimension_numbers = #tpu.dot_dimension_numbers<[1], [0], [0], [1], [0, 0, 1, 1], [], []>} : vector<128x128xbf16>, vector<128x128xbf16>, vector<128x128xf32> -> vector<128x128xf32>
    %7 = arith.addf %3, %6 : vector<128x128xf32>
    %c0_6 = arith.constant 0 : index
    %c0_7 = arith.constant 0 : index
    %8 = vector.load %arg8[%c0_6, %c0_7] : memref<128x128xf32, #tpu.memory_space<vmem>>, vector<128x128xf32>
    tpu.vector_store %arg8[%c0_6, %c0_7], %7 {strides = array<i32>} : memref<128x128xf32, #tpu.memory_space<vmem>>, vector<128x128xf32>,
    %c0_i32_8 = arith.constant 0 : i32
    %9 = arith.cmpi eq, %arg1, %c0_i32_8 : i32
    %10 = arith.extui %9 : i1 to i32
    %c0_i32_9 = arith.constant 0 : i32
    %11 = arith.cmpi ne, %10, %c0_i32_9 : i32
    scf.if %11 {
      %c0_10 = arith.constant 0 : index
      %c0_11 = arith.constant 0 : index
      %12 = vector.load %arg8[%c0_10, %c0_11] : memref<128x128xf32, #tpu.memory_space<vmem>>, vector<128x128xf32>
      %c0_12 = arith.constant 0 : index
      %c0_13 = arith.constant 0 : index
      %13 = vector.load %arg4[%c0_12, %c0_13] : memref<1x128xf32, #tpu.memory_space<vmem>>, vector<1x128xf32>
      %14 = vector.broadcast %13 : vector<1x128xf32> to vector<128x128xf32>
      %15 = arith.addf %12, %14 : vector<128x128xf32>
      %cst_14 = arith.constant 0.000000e+00 : f32
      %16 = vector.broadcast %cst_14 : f32 to vector<128x128xf32>
      %17 = arith.maximumf %15, %16 : vector<128x128xf32>
      %18 = arith.truncf %17 : vector<128x128xf32> to vector<128x128xbf16>
      %c0_15 = arith.constant 0 : index
      %c0_16 = arith.constant 0 : index
      %19 = vector.load %arg5[%c0_15, %c0_16] : memref<128x128xbf16, #tpu.memory_space<vmem>>, vector<128x128xbf16>
      %cst_17 = arith.constant dense<0.000000e+00> : vector<128x128xf32>
      %20 = tpu.matmul %18, %19, %cst_17 {dimension_numbers = #tpu.dot_dimension_numbers<[1], [0], [0], [1], [0, 0, 1, 1], [], []>} : vector<128x128xbf16>, vector<128x128xbf16>, vector<128x128xf32> -> vector<128x128xf32>
      %c0_18 = arith.constant 0 : index
      %c0_19 = arith.constant 0 : index
      %21 = vector.load %arg6[%c0_18, %c0_19] : memref<1x128xf32, #tpu.memory_space<vmem>>, vector<1x128xf32>
      %22 = vector.broadcast %21 : vector<1x128xf32> to vector<128x128xf32>
      %23 = arith.addf %20, %22 : vector<128x128xf32>
      %c0_20 = arith.constant 0 : index
      %c0_21 = arith.constant 0 : index
      %24 = vector.load %arg7[%c0_20, %c0_21] : memref<128x128xf32, #tpu.memory_space<vmem>>, vector<128x128xf32>
      tpu.vector_store %arg7[%c0_20, %c0_21], %23 {strides = array<i32>} : memref<128x128xf32, #tpu.memory_space<vmem>>, vector<128x128xf32>,
    } else {
    }
    return
  }
  func.func @transform_0(%arg0: i32, %arg1: i32) -> (i32, i32) {
    %c0_i32 = arith.constant 0 : i32
    return %arg0, %arg1 : i32, i32
  }
  func.func @transform_1(%arg0: i32, %arg1: i32) -> (i32, i32) {
    %c0_i32 = arith.constant 0 : i32
    %c0_i32_0 = arith.constant 0 : i32
    return %arg1, %c0_i32 : i32, i32
  }
  func.func @transform_2(%arg0: i32, %arg1: i32) -> (i32, i32) {
    %c0_i32 = arith.constant 0 : i32
    %c0_i32_0 = arith.constant 0 : i32
    %c0_i32_1 = arith.constant 0 : i32
    return %c0_i32, %c0_i32_0 : i32, i32
  }
  func.func @transform_3(%arg0: i32, %arg1: i32) -> (i32, i32) {
    %c0_i32 = arith.constant 0 : i32
    %c0_i32_0 = arith.constant 0 : i32
    %c0_i32_1 = arith.constant 0 : i32
    return %c0_i32, %c0_i32_0 : i32, i32
  }
  func.func @transform_4(%arg0: i32, %arg1: i32) -> (i32, i32) {
    %c0_i32 = arith.constant 0 : i32
    %c0_i32_0 = arith.constant 0 : i32
    %c0_i32_1 = arith.constant 0 : i32
    return %c0_i32, %c0_i32_0 : i32, i32
  }
  func.func @transform_5(%arg0: i32, %arg1: i32) -> (i32, i32) {
    %c0_i32 = arith.constant 0 : i32
    %c0_i32_0 = arith.constant 0 : i32
    return %arg0, %c0_i32 : i32, i32
  }
}

</mosaic_0001>

<bundles_post_ra>
// kernel: gcn_forward.4
= control target key start
LH: loop header
LB: loop body
LE: loop exit
PB: predicated region body
PF: predicated region fallthrough
CT: control target
= control target key end

     0   :  { %s462_s1 = inlined_call_operand.vmem [shape: bf16[128,128], index: 1, kind: input, shape index: {}]   ;;  %s463_s0 = inlined_call_operand.vmem [shape: bf16[128,128], index: 0, kind: input, shape index: {}]   ;;  %s464_s2 = inlined_call_operand.vmem [shape: bf16[128,128], index: 2, kind: output, shape index: {}]  }
   0x1   :  { %v303_v0 = vld [vmem:[%s462_s1 + $0x38] sm:$0xff]  ;;  %v302_v1 = vld [vmem:[%s462_s1 + $0x30] sm:$0xff]  ;;  %v301_v2 = vld [vmem:[%s462_s1 + $0x28] sm:$0xff] }
   0x2   :  { %139 = vmatpush.bf16.msra.mxu0 %v303_v0  ;;  %351 = vmatpush.bf16.msra.mxu1 %v303_v0  ;;  %v300_v3 = vld [vmem:[%s462_s1 + $0x20] sm:$0xff]  ;;  %v299_v4 = vld [vmem:[%s462_s1 + $0x18] sm:$0xff]  ;;  %v298_v5 = vld [vmem:[%s462_s1 + $0x10] sm:$0xff] }
   0x3   :  { %352 = vmatpush.bf16.msra.mxu2 %v303_v0  ;;  %353 = vmatpush.bf16.msra.mxu3 %v303_v0  ;;  %v297_v6 = vld [vmem:[%s462_s1 + $0x8] sm:$0xff]  ;;  %v296_v7 = vld [vmem:[%s462_s1] sm:$0xff]  ;;  %v290_v9 = vld [vmem:[%s463_s0 + $0x10] sm:$0xff] }
   0x4   :  { %v288_v8 = vld [vmem:[%s463_s0] sm:$0xff]  ;;  %v294_v11 = vld [vmem:[%s463_s0 + $0x30] sm:$0xff]  ;;  %v289_v12 = vld [vmem:[%s463_s0 + $0x8] sm:$0xff] }
   0x5   :  { %v292_v10 = vld [vmem:[%s463_s0 + $0x20] sm:$0xff]  ;;  %v291_v13 = vld [vmem:[%s463_s0 + $0x18] sm:$0xff]  ;;  %v293_v14 = vld [vmem:[%s463_s0 + $0x28] sm:$0xff] }
   0x6   :  { %140 = vmatpush.bf16.msra.mxu0 %v302_v1  ;;  %354 = vmatpush.bf16.msra.mxu1 %v302_v1  ;;  %v295_v15 = vld [vmem:[%s463_s0 + $0x38] sm:$0xff] }
   0x7   :  { %355 = vmatpush.bf16.msra.mxu2 %v302_v1  ;;  %356 = vmatpush.bf16.msra.mxu3 %v302_v1 }
   0xa   :  { %141 = vmatpush.bf16.msra.mxu0 %v301_v2  ;;  %357 = vmatpush.bf16.msra.mxu1 %v301_v2 }
   0xb   :  { %358 = vmatpush.bf16.msra.mxu2 %v301_v2  ;;  %359 = vmatpush.bf16.msra.mxu3 %v301_v2 }
   0xe   :  { %142 = vmatpush.bf16.msra.mxu0 %v300_v3  ;;  %360 = vmatpush.bf16.msra.mxu1 %v300_v3 }
   0xf   :  { %361 = vmatpush.bf16.msra.mxu2 %v300_v3  ;;  %362 = vmatpush.bf16.msra.mxu3 %v300_v3 }
  0x12   :  { %143 = vmatpush.bf16.msra.mxu0 %v299_v4  ;;  %363 = vmatpush.bf16.msra.mxu1 %v299_v4 }
  0x13   :  { %364 = vmatpush.bf16.msra.mxu2 %v299_v4  ;;  %365 = vmatpush.bf16.msra.mxu3 %v299_v4 }
  0x16   :  { %144 = vmatpush.bf16.msra.mxu0 %v298_v5  ;;  %366 = vmatpush.bf16.msra.mxu1 %v298_v5 }
  0x17   :  { %367 = vmatpush.bf16.msra.mxu2 %v298_v5  ;;  %368 = vmatpush.bf16.msra.mxu3 %v298_v5 }
  0x1a   :  { %145 = vmatpush.bf16.msra.mxu0 %v297_v6  ;;  %369 = vmatpush.bf16.msra.mxu1 %v297_v6 }
  0x1b   :  { %370 = vmatpush.bf16.msra.mxu2 %v297_v6  ;;  %371 = vmatpush.bf16.msra.mxu3 %v297_v6 }
  0x1e   :  { %146 = vmatpush.bf16.msra.mxu0 %v296_v7  ;;  %372 = vmatpush.bf16.msra.mxu1 %v296_v7 }
  0x1f   :  { %373 = vmatpush.bf16.msra.mxu2 %v296_v7  ;;  %374 = vmatpush.bf16.msra.mxu3 %v296_v7 }
  0x21   :  { %147 = vmatmul.bf16.vlgmr.msra.gmra.mxu0 %v288_v8  ;;  %157 = vmatmul.bf16.vlgmr.msra.gmra.mxu1 %v290_v9 }
  0x22   :  { %167 = vmatmul.bf16.vlgmr.msra.gmra.mxu2 %v292_v10  ;;  %177 = vmatmul.bf16.vlgmr.msra.gmra.mxu3 %v294_v11 }
  0x31   :  { %152 = vmatmul.bf16.gmra.mxu0 %v289_v12  ;;  %162 = vmatmul.bf16.gmra.mxu1 %v291_v13 }
  0x32   :  { %172 = vmatmul.bf16.gmra.mxu2 %v293_v14  ;;  %182 = vmatmul.bf16.gmra.mxu3 %v295_v15 }
  0x9e   :  { %v148_v16 = vpop.f32.mrf.mxu0  ;;  %v158_v17 = vpop.f32.mrf.mxu1 }
  0xa5   :  { %v168_v18 = vpop.f32.mrf.mxu2  ;;  %v178_v19 = vpop.f32.mrf.mxu3 }
  0xa6   :  { %v150_v20 = vpop.f32.mrf.mxu0  ;;  %v160_v21 = vpop.f32.mrf.mxu1 }
  0xa7   :  { %v307_v22 = vpack.c.bf16 %v150_v20, %v148_v16  ;;  %v317_v23 = vpack.c.bf16 %v160_v21, %v158_v17 }
  0xa9   :  { %308 = vst [vmem:[%s464_s2] sm:$0xff] %v307_v22  }
  0xaa   :  { %345 = vst [vmem:[%s464_s2 + $0x10] sm:$0xff] %v317_v23  }
  0xad   :  { %v170_v24 = vpop.f32.mrf.mxu2  ;;  %v180_v25 = vpop.f32.mrf.mxu3 }
  0xae   :  { %v327_v26 = vpack.c.bf16 %v170_v24, %v168_v18  ;;  %v337_v27 = vpack.c.bf16 %v180_v25, %v178_v19  ;;  %v153_v28 = vpop.f32.mrf.mxu0  ;;  %v163_v29 = vpop.f32.mrf.mxu1 }
  0xb0   :  { %347 = vst [vmem:[%s464_s2 + $0x20] sm:$0xff] %v327_v26  }
  0xb1   :  { %349 = vst [vmem:[%s464_s2 + $0x30] sm:$0xff] %v337_v27  }
  0xb5   :  { %v173_v30 = vpop.f32.mrf.mxu2  ;;  %v183_v31 = vpop.f32.mrf.mxu3 }
  0xb6   :  { %v155_v32 = vpop.f32.mrf.mxu0  ;;  %v165_v33 = vpop.f32.mrf.mxu1 }
  0xb7   :  { %v312_v34 = vpack.c.bf16 %v155_v32, %v153_v28  ;;  %v322_v35 = vpack.c.bf16 %v165_v33, %v163_v29 }
  0xb9   :  { %344 = vst [vmem:[%s464_s2 + $0x8] sm:$0xff] %v312_v34  }
  0xba   :  { %346 = vst [vmem:[%s464_s2 + $0x18] sm:$0xff] %v322_v35  }
  0xbd   :  { %v175_v36 = vpop.f32.mrf.mxu2  ;;  %v185_v37 = vpop.f32.mrf.mxu3 }
  0xbe   :  { %v332_v38 = vpack.c.bf16 %v175_v36, %v173_v30  ;;  %v342_v39 = vpack.c.bf16 %v185_v37, %v183_v31 }
  0xc0   :  { %348 = vst [vmem:[%s464_s2 + $0x28] sm:$0xff] %v332_v38  }
  0xc1   :  { %350 = vst [vmem:[%s464_s2 + $0x38] sm:$0xff] %v342_v39  }

// kernel: gcn_forward.5
= control target key start
LH: loop header
LB: loop body
LE: loop exit
PB: predicated region body
PF: predicated region fallthrough
CT: control target
= control target key end

     0   :  { %s597_s1 = inlined_call_operand.vmem [shape: bf16[128,128], index: 1, kind: input, shape index: {}]   ;;  %s598_s2 = inlined_call_operand.vmem [shape: f32[1,128], index: 2, kind: input, shape index: {}]   ;;  %s599_s0 = inlined_call_operand.vmem [shape: bf16[128,128], index: 0, kind: input, shape index: {}]   ;;  %s600_s3 = inlined_call_operand.vmem [shape: bf16[128,128], index: 3, kind: output, shape index: {}]  }
   0x1   :  { %v429_v0 = vld [vmem:[%s597_s1 + $0x38] sm:$0xff]  ;;  %v428_v1 = vld [vmem:[%s597_s1 + $0x30] sm:$0xff]  ;;  %v427_v2 = vld [vmem:[%s597_s1 + $0x28] sm:$0xff] }
   0x2   :  { %178 = vmatpush.bf16.msra.mxu0 %v429_v0  ;;  %477 = vmatpush.bf16.msra.mxu1 %v429_v0  ;;  %v426_v3 = vld [vmem:[%s597_s1 + $0x20] sm:$0xff]  ;;  %v425_v4 = vld [vmem:[%s597_s1 + $0x18] sm:$0xff]  ;;  %v424_v5 = vld [vmem:[%s597_s1 + $0x10] sm:$0xff] }
   0x3   :  { %478 = vmatpush.bf16.msra.mxu2 %v429_v0  ;;  %479 = vmatpush.bf16.msra.mxu3 %v429_v0  ;;  %v423_v6 = vld [vmem:[%s597_s1 + $0x8] sm:$0xff]  ;;  %v422_v7 = vld [vmem:[%s597_s1] sm:$0xff]  ;;  %v416_v9 = vld [vmem:[%s599_s0 + $0x10] sm:$0xff] }
   0x4   :  { %v414_v8 = vld [vmem:[%s599_s0] sm:$0xff]  ;;  %v420_v11 = vld [vmem:[%s599_s0 + $0x30] sm:$0xff]  ;;  %v415_v12 = vld [vmem:[%s599_s0 + $0x8] sm:$0xff] }
   0x5   :  { %v418_v10 = vld [vmem:[%s599_s0 + $0x20] sm:$0xff]  ;;  %v417_v13 = vld [vmem:[%s599_s0 + $0x18] sm:$0xff]  ;;  %v419_v14 = vld [vmem:[%s599_s0 + $0x28] sm:$0xff] }
   0x6   :  { %179 = vmatpush.bf16.msra.mxu0 %v428_v1  ;;  %480 = vmatpush.bf16.msra.mxu1 %v428_v1  ;;  %v421_v15 = vld [vmem:[%s599_s0 + $0x38] sm:$0xff]  ;;  %v501_v18 = vld [vmem:[%s598_s2] ss:$0 sm:$0xff] }
   0x7   :  { %481 = vmatpush.bf16.msra.mxu2 %v428_v1  ;;  %482 = vmatpush.bf16.msra.mxu3 %v428_v1 }
   0xa   :  { %180 = vmatpush.bf16.msra.mxu0 %v427_v2  ;;  %483 = vmatpush.bf16.msra.mxu1 %v427_v2 }
   0xb   :  { %484 = vmatpush.bf16.msra.mxu2 %v427_v2  ;;  %485 = vmatpush.bf16.msra.mxu3 %v427_v2 }
   0xe   :  { %181 = vmatpush.bf16.msra.mxu0 %v426_v3  ;;  %486 = vmatpush.bf16.msra.mxu1 %v426_v3 }
   0xf   :  { %487 = vmatpush.bf16.msra.mxu2 %v426_v3  ;;  %488 = vmatpush.bf16.msra.mxu3 %v426_v3 }
  0x12   :  { %182 = vmatpush.bf16.msra.mxu0 %v425_v4  ;;  %489 = vmatpush.bf16.msra.mxu1 %v425_v4 }
  0x13   :  { %490 = vmatpush.bf16.msra.mxu2 %v425_v4  ;;  %491 = vmatpush.bf16.msra.mxu3 %v425_v4 }
  0x16   :  { %183 = vmatpush.bf16.msra.mxu0 %v424_v5  ;;  %492 = vmatpush.bf16.msra.mxu1 %v424_v5 }
  0x17   :  { %493 = vmatpush.bf16.msra.mxu2 %v424_v5  ;;  %494 = vmatpush.bf16.msra.mxu3 %v424_v5 }
  0x1a   :  { %184 = vmatpush.bf16.msra.mxu0 %v423_v6  ;;  %495 = vmatpush.bf16.msra.mxu1 %v423_v6 }
  0x1b   :  { %496 = vmatpush.bf16.msra.mxu2 %v423_v6  ;;  %497 = vmatpush.bf16.msra.mxu3 %v423_v6 }
  0x1e   :  { %185 = vmatpush.bf16.msra.mxu0 %v422_v7  ;;  %498 = vmatpush.bf16.msra.mxu1 %v422_v7 }
  0x1f   :  { %499 = vmatpush.bf16.msra.mxu2 %v422_v7  ;;  %500 = vmatpush.bf16.msra.mxu3 %v422_v7 }
  0x21   :  { %186 = vmatmul.bf16.vlgmr.msra.gmra.mxu0 %v414_v8  ;;  %196 = vmatmul.bf16.vlgmr.msra.gmra.mxu1 %v416_v9 }
  0x22   :  { %206 = vmatmul.bf16.vlgmr.msra.gmra.mxu2 %v418_v10  ;;  %216 = vmatmul.bf16.vlgmr.msra.gmra.mxu3 %v420_v11 }
  0x31   :  { %191 = vmatmul.bf16.gmra.mxu0 %v415_v12  ;;  %201 = vmatmul.bf16.gmra.mxu1 %v417_v13 }
  0x32   :  { %211 = vmatmul.bf16.gmra.mxu2 %v419_v14  ;;  %221 = vmatmul.bf16.gmra.mxu3 %v421_v15 }
  0x9e   :  { %v187_v16 = vpop.f32.mrf.mxu0  ;;  %v197_v17 = vpop.f32.mrf.mxu1 }
  0x9f   :  { %v282_v19 = vadd.f32 %v501_v18, %v187_v16  ;;  %v286_v20 = vadd.f32 %v501_v18, %v197_v17 }
  0xa1   :  { %v298_v27 = vmax.f32 %v282_v19, 0.0  ;;  %v302_v28 = vmax.f32 %v286_v20, 0.0 }
  0xa5   :  { %v207_v21 = vpop.f32.mrf.mxu2  ;;  %v217_v22 = vpop.f32.mrf.mxu3 }
  0xa6   :  { %v189_v23 = vpop.f32.mrf.mxu0  ;;  %v199_v24 = vpop.f32.mrf.mxu1  ;;  %v290_v33 = vadd.f32 %v501_v18, %v207_v21  ;;  %v294_v34 = vadd.f32 %v501_v18, %v217_v22 }
  0xa7   :  { %v283_v25 = vadd.f32 %v501_v18, %v189_v23  ;;  %v287_v26 = vadd.f32 %v501_v18, %v199_v24 }
  0xa8   :  { %v306_v41 = vmax.f32 %v290_v33, 0.0  ;;  %v310_v42 = vmax.f32 %v294_v34, 0.0 }
  0xa9   :  { %v299_v29 = vmax.f32 %v283_v25, 0.0  ;;  %v303_v30 = vmax.f32 %v287_v26, 0.0 }
  0xab   :  { %v433_v31 = vpack.c.bf16 %v299_v29, %v298_v27  ;;  %v443_v32 = vpack.c.bf16 %v303_v30, %v302_v28 }
  0xad   :  { %434 = vst [vmem:[%s600_s3] sm:$0xff] %v433_v31   ;;  %v209_v35 = vpop.f32.mrf.mxu2  ;;  %v219_v36 = vpop.f32.mrf.mxu3 }
  0xae   :  { %471 = vst [vmem:[%s600_s3 + $0x10] sm:$0xff] %v443_v32   ;;  %v291_v37 = vadd.f32 %v501_v18, %v209_v35  ;;  %v295_v38 = vadd.f32 %v501_v18, %v219_v36  ;;  %v192_v39 = vpop.f32.mrf.mxu0  ;;  %v202_v40 = vpop.f32.mrf.mxu1 }
  0xaf   :  { %v284_v47 = vadd.f32 %v501_v18, %v192_v39  ;;  %v288_v48 = vadd.f32 %v501_v18, %v202_v40 }
  0xb0   :  { %v307_v43 = vmax.f32 %v291_v37, 0.0  ;;  %v311_v44 = vmax.f32 %v295_v38, 0.0 }
  0xb1   :  { %v300_v55 = vmax.f32 %v284_v47, 0.0  ;;  %v304_v56 = vmax.f32 %v288_v48, 0.0 }
  0xb2   :  { %v453_v45 = vpack.c.bf16 %v307_v43, %v306_v41  ;;  %v463_v46 = vpack.c.bf16 %v311_v44, %v310_v42 }
  0xb4   :  { %473 = vst [vmem:[%s600_s3 + $0x20] sm:$0xff] %v453_v45  }
  0xb5   :  { %475 = vst [vmem:[%s600_s3 + $0x30] sm:$0xff] %v463_v46   ;;  %v212_v49 = vpop.f32.mrf.mxu2  ;;  %v222_v50 = vpop.f32.mrf.mxu3 }
  0xb6   :  { %v194_v51 = vpop.f32.mrf.mxu0  ;;  %v204_v52 = vpop.f32.mrf.mxu1  ;;  %v292_v61 = vadd.f32 %v501_v18, %v212_v49  ;;  %v296_v62 = vadd.f32 %v501_v18, %v222_v50 }
  0xb7   :  { %v285_v53 = vadd.f32 %v501_v18, %v194_v51  ;;  %v289_v54 = vadd.f32 %v501_v18, %v204_v52 }
  0xb8   :  { %v308_v3 = vmax.f32 %v292_v61, 0.0  ;;  %v312_v4 = vmax.f32 %v296_v62, 0.0 }
  0xb9   :  { %v301_v57 = vmax.f32 %v285_v53, 0.0  ;;  %v305_v58 = vmax.f32 %v289_v54, 0.0 }
  0xbb   :  { %v438_v59 = vpack.c.bf16 %v301_v57, %v300_v55  ;;  %v448_v60 = vpack.c.bf16 %v305_v58, %v304_v56 }
  0xbd   :  { %470 = vst [vmem:[%s600_s3 + $0x8] sm:$0xff] %v438_v59   ;;  %v214_v63 = vpop.f32.mrf.mxu2  ;;  %v224_v0 = vpop.f32.mrf.mxu3 }
  0xbe   :  { %472 = vst [vmem:[%s600_s3 + $0x18] sm:$0xff] %v448_v60   ;;  %v293_v1 = vadd.f32 %v501_v18, %v214_v63  ;;  %v297_v2 = vadd.f32 %v501_v18, %v224_v0 }
  0xc0   :  { %v309_v5 = vmax.f32 %v293_v1, 0.0  ;;  %v313_v6 = vmax.f32 %v297_v2, 0.0 }
  0xc2   :  { %v458_v7 = vpack.c.bf16 %v309_v5, %v308_v3  ;;  %v468_v8 = vpack.c.bf16 %v313_v6, %v312_v4 }
  0xc4   :  { %474 = vst [vmem:[%s600_s3 + $0x28] sm:$0xff] %v458_v7  }
  0xc5   :  { %476 = vst [vmem:[%s600_s3 + $0x38] sm:$0xff] %v468_v8  }

// kernel: gcn_forward.7
= control target key start
LH: loop header
LB: loop body
LE: loop exit
PB: predicated region body
PF: predicated region fallthrough
CT: control target
= control target key end

     0   :  { %s759_s1 = inlined_call_operand.vmem [shape: bf16[128,128], index: 1, kind: input, shape index: {}]   ;;  %s760_s2 = inlined_call_operand.vmem [shape: f32[1,128], index: 2, kind: input, shape index: {}]   ;;  %s761_s0 = inlined_call_operand.vmem [shape: bf16[128,128], index: 0, kind: input, shape index: {}]   ;;  %s762_s3 = inlined_call_operand.vmem [shape: bf16[128,128], index: 3, kind: input, shape index: {}]   ;;  %s763_s4 = inlined_call_operand.vmem [shape: f32[1,128], index: 4, kind: input, shape index: {}]   ;;  %s764_s5 = inlined_call_operand.vmem [shape: f32[128,128], index: 5, kind: output, shape index: {}]  }
   0x1   :  { %v576_v0 = vld [vmem:[%s759_s1 + $0x38] sm:$0xff]  ;;  %v575_v1 = vld [vmem:[%s759_s1 + $0x30] sm:$0xff]  ;;  %v574_v2 = vld [vmem:[%s759_s1 + $0x28] sm:$0xff] }
   0x2   :  { %184 = vmatpush.bf16.msra.mxu0 %v576_v0  ;;  %585 = vmatpush.bf16.msra.mxu2 %v576_v0  ;;  %v573_v3 = vld [vmem:[%s759_s1 + $0x20] sm:$0xff]  ;;  %v572_v4 = vld [vmem:[%s759_s1 + $0x18] sm:$0xff]  ;;  %v571_v5 = vld [vmem:[%s759_s1 + $0x10] sm:$0xff] }
   0x3   :  { %v570_v6 = vld [vmem:[%s759_s1 + $0x8] sm:$0xff]  ;;  %v569_v7 = vld [vmem:[%s759_s1] sm:$0xff]  ;;  %v584_v12 = vld [vmem:[%s762_s3 + $0x38] sm:$0xff] }
   0x4   :  { %v561_v8 = vld [vmem:[%s761_s0] sm:$0xff]  ;;  %v562_v10 = vld [vmem:[%s761_s0 + $0x8] sm:$0xff]  ;;  %396 = vmatpush.bf16.msra.mxu1 %v584_v12  ;;  %v583_v13 = vld [vmem:[%s762_s3 + $0x30] sm:$0xff]  ;;  %593 = vmatpush.bf16.msra.mxu3 %v584_v12 }
   0x5   :  { %v565_v9 = vld [vmem:[%s761_s0 + $0x20] sm:$0xff]  ;;  %v566_v11 = vld [vmem:[%s761_s0 + $0x28] sm:$0xff]  ;;  %v563_v16 = vld [vmem:[%s761_s0 + $0x10] sm:$0xff] }
   0x6   :  { %185 = vmatpush.bf16.msra.mxu0 %v575_v1  ;;  %586 = vmatpush.bf16.msra.mxu2 %v575_v1  ;;  %v582_v14 = vld [vmem:[%s762_s3 + $0x28] sm:$0xff]  ;;  %v581_v15 = vld [vmem:[%s762_s3 + $0x20] sm:$0xff]  ;;  %v567_v17 = vld [vmem:[%s761_s0 + $0x30] sm:$0xff] }
   0x7   :  { %v564_v18 = vld [vmem:[%s761_s0 + $0x18] sm:$0xff]  ;;  %v579_v21 = vld [vmem:[%s762_s3 + $0x10] sm:$0xff]  ;;  %v578_v22 = vld [vmem:[%s762_s3 + $0x8] sm:$0xff] }
   0x8   :  { %397 = vmatpush.bf16.msra.mxu1 %v583_v13  ;;  %594 = vmatpush.bf16.msra.mxu3 %v583_v13  ;;  %v568_v19 = vld [vmem:[%s761_s0 + $0x38] sm:$0xff]  ;;  %v577_v23 = vld [vmem:[%s762_s3] sm:$0xff] }
   0x9   :  { %v580_v20 = vld [vmem:[%s762_s3 + $0x18] sm:$0xff]  ;;  %v601_v25 = vld [vmem:[%s760_s2] ss:$0 sm:$0xff] }
   0xa   :  { %186 = vmatpush.bf16.msra.mxu0 %v574_v2  ;;  %587 = vmatpush.bf16.msra.mxu2 %v574_v2 }
   0xc   :  { %398 = vmatpush.bf16.msra.mxu1 %v582_v14  ;;  %595 = vmatpush.bf16.msra.mxu3 %v582_v14 }
   0xe   :  { %187 = vmatpush.bf16.msra.mxu0 %v573_v3  ;;  %588 = vmatpush.bf16.msra.mxu2 %v573_v3 }
  0x10   :  { %399 = vmatpush.bf16.msra.mxu1 %v581_v15  ;;  %596 = vmatpush.bf16.msra.mxu3 %v581_v15 }
  0x12   :  { %188 = vmatpush.bf16.msra.mxu0 %v572_v4  ;;  %589 = vmatpush.bf16.msra.mxu2 %v572_v4 }
  0x14   :  { %400 = vmatpush.bf16.msra.mxu1 %v580_v20  ;;  %597 = vmatpush.bf16.msra.mxu3 %v580_v20 }
  0x16   :  { %189 = vmatpush.bf16.msra.mxu0 %v571_v5  ;;  %590 = vmatpush.bf16.msra.mxu2 %v571_v5 }
  0x18   :  { %401 = vmatpush.bf16.msra.mxu1 %v579_v21  ;;  %598 = vmatpush.bf16.msra.mxu3 %v579_v21 }
  0x1a   :  { %190 = vmatpush.bf16.msra.mxu0 %v570_v6  ;;  %591 = vmatpush.bf16.msra.mxu2 %v570_v6 }
  0x1c   :  { %402 = vmatpush.bf16.msra.mxu1 %v578_v22  ;;  %599 = vmatpush.bf16.msra.mxu3 %v578_v22 }
  0x1e   :  { %191 = vmatpush.bf16.msra.mxu0 %v569_v7  ;;  %592 = vmatpush.bf16.msra.mxu2 %v569_v7 }
  0x20   :  { %403 = vmatpush.bf16.msra.mxu1 %v577_v23  ;;  %600 = vmatpush.bf16.msra.mxu3 %v577_v23 }
  0x21   :  { %192 = vmatmul.bf16.vlgmr.msra.gmra.mxu0 %v561_v8  ;;  %212 = vmatmul.bf16.vlgmr.msra.gmra.mxu2 %v565_v9 }
  0x31   :  { %197 = vmatmul.bf16.gmra.mxu0 %v562_v10  ;;  %217 = vmatmul.bf16.gmra.mxu2 %v566_v11 }
  0x41   :  { %202 = vmatmul.bf16.gmra.mxu0 %v563_v16  ;;  %222 = vmatmul.bf16.gmra.mxu2 %v567_v17  ;;  %v602_v17 = vld [vmem:[%s763_s4] ss:$0 sm:$0xff] }
  0x51   :  { %207 = vmatmul.bf16.gmra.mxu0 %v564_v18  ;;  %227 = vmatmul.bf16.gmra.mxu2 %v568_v19 }
  0x9e   :  { %v193_v24 = vpop.f32.mrf.mxu0 }
  0x9f   :  { %v288_v26 = vadd.f32 %v601_v25, %v193_v24 }
  0xa1   :  { %v304_v29 = vmax.f32 %v288_v26, 0.0 }
  0xa4   :  { %v213_v27 = vpop.f32.mrf.mxu2 }
  0xa5   :  { %v296_v32 = vadd.f32 %v601_v25, %v213_v27 }
  0xa6   :  { %v195_v28 = vpop.f32.mrf.mxu0 }
  0xa7   :  { %v289_v30 = vadd.f32 %v601_v25, %v195_v28  ;;  %v312_v37 = vmax.f32 %v296_v32, 0.0 }
  0xa9   :  { %v305_v31 = vmax.f32 %v289_v30, 0.0 }
  0xab   :  { %v320_v33 = vpack.c.bf16 %v305_v31, %v304_v29 }
  0xac   :  { %v215_v34 = vpop.f32.mrf.mxu2 }
  0xad   :  { %v297_v35 = vadd.f32 %v601_v25, %v215_v34  ;;  %404 = vmatmul.bf16.vlgmr.msra.gmra.mxu1 %v320_v33 }
  0xae   :  { %v198_v36 = vpop.f32.mrf.mxu0 }
  0xaf   :  { %v313_v38 = vmax.f32 %v297_v35, 0.0  ;;  %v290_v40 = vadd.f32 %v601_v25, %v198_v36 }
  0xb1   :  { %v324_v39 = vpack.c.bf16 %v313_v38, %v312_v37  ;;  %v306_v43 = vmax.f32 %v290_v40, 0.0 }
  0xb3   :  { %424 = vmatmul.bf16.vlgmr.msra.gmra.mxu3 %v324_v39 }
  0xb4   :  { %v218_v41 = vpop.f32.mrf.mxu2 }
  0xb5   :  { %v298_v46 = vadd.f32 %v601_v25, %v218_v41 }
  0xb6   :  { %v200_v42 = vpop.f32.mrf.mxu0 }
  0xb7   :  { %v291_v44 = vadd.f32 %v601_v25, %v200_v42  ;;  %v314_v51 = vmax.f32 %v298_v46, 0.0 }
  0xb9   :  { %v307_v45 = vmax.f32 %v291_v44, 0.0 }
  0xbb   :  { %v321_v47 = vpack.c.bf16 %v307_v45, %v306_v43 }
  0xbc   :  { %v220_v48 = vpop.f32.mrf.mxu2 }
  0xbd   :  { %v299_v49 = vadd.f32 %v601_v25, %v220_v48  ;;  %409 = vmatmul.bf16.gmra.mxu1 %v321_v47 }
  0xbe   :  { %v203_v50 = vpop.f32.mrf.mxu0 }
  0xbf   :  { %v315_v52 = vmax.f32 %v299_v49, 0.0  ;;  %v292_v54 = vadd.f32 %v601_v25, %v203_v50 }
  0xc1   :  { %v325_v53 = vpack.c.bf16 %v315_v52, %v314_v51  ;;  %v308_v57 = vmax.f32 %v292_v54, 0.0 }
  0xc3   :  { %429 = vmatmul.bf16.gmra.mxu3 %v325_v53 }
  0xc4   :  { %v223_v55 = vpop.f32.mrf.mxu2 }
  0xc5   :  { %v300_v60 = vadd.f32 %v601_v25, %v223_v55 }
  0xc6   :  { %v205_v56 = vpop.f32.mrf.mxu0 }
  0xc7   :  { %v293_v58 = vadd.f32 %v601_v25, %v205_v56  ;;  %v316_v1 = vmax.f32 %v300_v60, 0.0 }
  0xc9   :  { %v309_v59 = vmax.f32 %v293_v58, 0.0 }
  0xcb   :  { %v322_v61 = vpack.c.bf16 %v309_v59, %v308_v57 }
  0xcc   :  { %v225_v62 = vpop.f32.mrf.mxu2 }
  0xcd   :  { %v301_v63 = vadd.f32 %v601_v25, %v225_v62  ;;  %414 = vmatmul.bf16.gmra.mxu1 %v322_v61 }
  0xce   :  { %v208_v0 = vpop.f32.mrf.mxu0 }
  0xcf   :  { %v317_v2 = vmax.f32 %v301_v63, 0.0  ;;  %v294_v4 = vadd.f32 %v601_v25, %v208_v0 }
  0xd1   :  { %v326_v3 = vpack.c.bf16 %v317_v2, %v316_v1  ;;  %v310_v7 = vmax.f32 %v294_v4, 0.0 }
  0xd3   :  { %434 = vmatmul.bf16.gmra.mxu3 %v326_v3 }
  0xd4   :  { %v228_v5 = vpop.f32.mrf.mxu2 }
  0xd5   :  { %v302_v10 = vadd.f32 %v601_v25, %v228_v5 }
  0xd6   :  { %v210_v6 = vpop.f32.mrf.mxu0 }
  0xd7   :  { %v295_v8 = vadd.f32 %v601_v25, %v210_v6  ;;  %v318_v14 = vmax.f32 %v302_v10, 0.0 }
  0xd9   :  { %v311_v9 = vmax.f32 %v295_v8, 0.0 }
  0xdb   :  { %v323_v11 = vpack.c.bf16 %v311_v9, %v310_v7 }
  0xdc   :  { %v230_v12 = vpop.f32.mrf.mxu2 }
  0xdd   :  { %v303_v13 = vadd.f32 %v601_v25, %v230_v12  ;;  %419 = vmatmul.bf16.gmra.mxu1 %v323_v11 }
  0xdf   :  { %v319_v15 = vmax.f32 %v303_v13, 0.0 }
  0xe1   :  { %v327_v16 = vpack.c.bf16 %v319_v15, %v318_v14 }
  0xe3   :  { %439 = vmatmul.bf16.gmra.mxu3 %v327_v16 }
 0x12a   :  { %v405_v18 = vpop.f32.mrf.mxu1 }
 0x12b   :  { %v406_v19 = vadd.f32 %v602_v17, %v405_v18 }
 0x12d   :  { %445 = vst [vmem:[%s764_s5] sm:$0xff] %v406_v19 }
 0x132   :  { %v407_v20 = vpop.f32.mrf.mxu1 }
 0x133   :  { %v408_v21 = vadd.f32 %v602_v17, %v407_v20 }
 0x135   :  { %446 = vst [vmem:[%s764_s5 + $0x8] sm:$0xff] %v408_v21 }
 0x136   :  { %v425_v22 = vpop.f32.mrf.mxu3 }
 0x137   :  { %v426_v23 = vadd.f32 %v602_v17, %v425_v22 }
 0x139   :  { %453 = vst [vmem:[%s764_s5 + $0x40] sm:$0xff] %v426_v23 }
 0x13a   :  { %v410_v24 = vpop.f32.mrf.mxu1 }
 0x13b   :  { %v411_v25 = vadd.f32 %v602_v17, %v410_v24 }
 0x13d   :  { %447 = vst [vmem:[%s764_s5 + $0x10] sm:$0xff] %v411_v25 }
 0x13e   :  { %v427_v26 = vpop.f32.mrf.mxu3 }
 0x13f   :  { %v428_v27 = vadd.f32 %v602_v17, %v427_v26 }
 0x141   :  { %454 = vst [vmem:[%s764_s5 + $0x48] sm:$0xff] %v428_v27 }
 0x142   :  { %v412_v28 = vpop.f32.mrf.mxu1 }
 0x143   :  { %v413_v29 = vadd.f32 %v602_v17, %v412_v28 }
 0x145   :  { %448 = vst [vmem:[%s764_s5 + $0x18] sm:$0xff] %v413_v29 }
 0x146   :  { %v430_v30 = vpop.f32.mrf.mxu3 }
 0x147   :  { %v431_v31 = vadd.f32 %v602_v17, %v430_v30 }
 0x149   :  { %455 = vst [vmem:[%s764_s5 + $0x50] sm:$0xff] %v431_v31 }
 0x14a   :  { %v415_v32 = vpop.f32.mrf.mxu1 }
 0x14b   :  { %v416_v33 = vadd.f32 %v602_v17, %v415_v32 }
 0x14d   :  { %449 = vst [vmem:[%s764_s5 + $0x20] sm:$0xff] %v416_v33 }
 0x14e   :  { %v432_v34 = vpop.f32.mrf.mxu3 }
 0x14f   :  { %v433_v35 = vadd.f32 %v602_v17, %v432_v34 }
 0x151   :  { %456 = vst [vmem:[%s764_s5 + $0x58] sm:$0xff] %v433_v35 }
 0x152   :  { %v417_v36 = vpop.f32.mrf.mxu1 }
 0x153   :  { %v418_v37 = vadd.f32 %v602_v17, %v417_v36 }
 0x155   :  { %450 = vst [vmem:[%s764_s5 + $0x28] sm:$0xff] %v418_v37 }
 0x156   :  { %v435_v38 = vpop.f32.mrf.mxu3 }
 0x157   :  { %v436_v39 = vadd.f32 %v602_v17, %v435_v38 }
 0x159   :  { %457 = vst [vmem:[%s764_s5 + $0x60] sm:$0xff] %v436_v39 }
 0x15a   :  { %v420_v40 = vpop.f32.mrf.mxu1 }
 0x15b   :  { %v421_v41 = vadd.f32 %v602_v17, %v420_v40 }
 0x15d   :  { %451 = vst [vmem:[%s764_s5 + $0x30] sm:$0xff] %v421_v41 }
 0x15e   :  { %v437_v42 = vpop.f32.mrf.mxu3 }
 0x15f   :  { %v438_v43 = vadd.f32 %v602_v17, %v437_v42 }
 0x161   :  { %458 = vst [vmem:[%s764_s5 + $0x68] sm:$0xff] %v438_v43 }
 0x162   :  { %v422_v44 = vpop.f32.mrf.mxu1 }
 0x163   :  { %v423_v45 = vadd.f32 %v602_v17, %v422_v44 }
 0x165   :  { %452 = vst [vmem:[%s764_s5 + $0x38] sm:$0xff] %v423_v45 }
 0x166   :  { %v440_v46 = vpop.f32.mrf.mxu3 }
 0x167   :  { %v441_v47 = vadd.f32 %v602_v17, %v440_v46 }
 0x169   :  { %459 = vst [vmem:[%s764_s5 + $0x70] sm:$0xff] %v441_v47 }
 0x16e   :  { %v442_v48 = vpop.f32.mrf.mxu3 }
 0x16f   :  { %v443_v49 = vadd.f32 %v602_v17, %v442_v48 }
 0x171   :  { %460 = vst [vmem:[%s764_s5 + $0x78] sm:$0xff] %v443_v49 }

</bundles_post_ra>
